<compile_context>
chip_gen: v7x
topology: tpu7x:2x2x1
jax: 0.10.0
libtpu: 0.0.40
codegen_flags: <defaults>
</compile_context>

<pallas_src>
import jax
import jax.numpy as jnp
from jax.experimental import pallas as pl
from jax.experimental.pallas import tpu as pltpu


# ----------------------------------------------------------------------------
# Pallas kernel (lane-dense / transposed formulation):
#   X block: (20, TN)  ->  h = relu(W1^T @ X + b1) : (16, TN)
#                          o = W2^T @ h + b2       : (1,  TN)
# ----------------------------------------------------------------------------
def ffn_kernel(x_ref, w1t_ref, b1_ref, w2t_ref, b2_ref, o_ref):
    x = x_ref[...]                                                     # (20, TN)
    h = jnp.dot(w1t_ref[...], x, preferred_element_type=jnp.float32)   # (16, TN)
    h = jnp.maximum(h + b1_ref[...], 0.0)                              # (16,1) bias broadcasts along lanes
    o = jnp.dot(w2t_ref[...], h, preferred_element_type=jnp.float32)   # (1, TN)
    o_ref[...] = o + b2_ref[0, 0]                                      # scalar bias from SMEM


def ffn_pallas(x, w1t, b1, w2t, b2, *, tn=8192):
    """x: (K=20, M) f32 -> (1, M) f32.  No host-side pad/slice; the ragged
    final lane block is masked by Pallas on store."""
    K, M = x.shape
    H = w1t.shape[0]

    # Large lane tile for bandwidth, clamped to the 128-rounded problem size
    # so tiny inputs don't over-allocate / over-read.
    tn_eff = min(tn, pl.cdiv(M, 128) * 128)
    grid_m = pl.cdiv(M, tn_eff)

    out = pl.pallas_call(
        ffn_kernel,
        out_shape=jax.ShapeDtypeStruct((1, M), jnp.float32),
        grid_spec=pltpu.PrefetchScalarGridSpec(
            num_scalar_prefetch=0,
            grid=(grid_m,),
            in_specs=[
                pl.BlockSpec((K, tn_eff), lambda i: (0, i)),           # activations: lane tile
                pl.BlockSpec((H, K), lambda i: (0, 0)),                # W1^T (16, 20), replicated
                pl.BlockSpec((H, 1), lambda i: (0, 0)),                # b1   (16, 1),  replicated
                pl.BlockSpec((1, H), lambda i: (0, 0)),                # W2^T (1, 16),  replicated
                pl.BlockSpec(memory_space=pltpu.MemorySpace.SMEM),     # b2 scalar, SMEM
            ],
            out_specs=pl.BlockSpec((1, tn_eff), lambda i: (0, i)),     # lane-dense output block
        ),
        compiler_params=pltpu.CompilerParams(
            dimension_semantics=("parallel",),
        ),
    )(x, w1t, b1, w2t, b2)
    return out


# ----------------------------------------------------------------------------
# Parameter init (deterministic, PyTorch-nn.Linear-like uniform init)
# ----------------------------------------------------------------------------
def init_params(key):
    k1, k2, k3, k4 = jax.random.split(key, 4)
    # Linear(20, 16): torch weight is (16, 20) == W1^T; store it directly.
    bound1 = 1.0 / jnp.sqrt(20.0)
    w1t = jax.random.uniform(k1, (16, 20), jnp.float32, -bound1, bound1)
    b1 = jax.random.uniform(k2, (16, 1), jnp.float32, -bound1, bound1)
    # Linear(16, 1): torch weight is (1, 16) == W2^T; store it directly.
    bound2 = 1.0 / jnp.sqrt(16.0)
    w2t = jax.random.uniform(k3, (1, 16), jnp.float32, -bound2, bound2)
    b2 = jax.random.uniform(k4, (1, 1), jnp.float32, -bound2, bound2)
    return w1t, b1, w2t, b2


# ----------------------------------------------------------------------------
# Full forward (glue in plain JAX, hot path in Pallas)
# ----------------------------------------------------------------------------
def transformer_encoder_forward(q, src, params, *, tn=8192):
    """q, src: (S=20, B, N).  Returns (B, N)."""
    w1t, b1, w2t, b2 = params

    # TODO(synk): encoder layer stack (self.layers) is externally provided and
    # undefined here -> identity pass-through (q is unused in that case).
    output = src                                   # (20, B, N)

    S, B, N = output.shape
    # permute(1,2,0) followed by Linear over the last (=S) axis contracts the
    # S dimension; contracting it directly on the (S, B*N) layout is
    # mathematically identical and avoids materializing an HBM transpose.
    x = output.reshape(S, B * N).astype(jnp.float32)   # contiguous, free reshape

    y = ffn_pallas(x, w1t, b1, w2t, b2, tn=tn)     # (1, B*N)
    return y.reshape(B, N)                         # squeeze(-1)


# Pure-JAX reference (mirrors the PyTorch permute + ffn) for correctness check.
def _reference(q, src, params):
    w1t, b1, w2t, b2 = params
    out = jnp.transpose(src, (1, 2, 0)).astype(jnp.float32)   # (B, N, 20)
    h = jnp.maximum(out @ w1t.T + b1[:, 0], 0.0)              # (B, N, 16)
    return (h @ w2t.T + b2[0]).squeeze(-1)                    # (B, N)


if __name__ == "__main__":
    key = jax.random.PRNGKey(0)
    kp, kq, ks = jax.random.split(key, 3)

    params = init_params(kp)

    # seq dim must be 20 (Linear(20, 16)); B*N = 2400 is not a multiple of 128,
    # so the final (here: only) lane block is ragged and exercises the masked
    # store path, while staying small (<200 KB).
    S, B, N = 20, 2, 1200
    q = jax.random.normal(kq, (S, B, N), jnp.float32)
    src = jax.random.normal(ks, (S, B, N), jnp.float32)

    ref = _reference(q, src, params)

    # 1) Default (large-tile) path: single ragged block.
    out = transformer_encoder_forward(q, src, params)
    out = jax.block_until_ready(out)
    assert out.shape == (B, N), out.shape
    assert jnp.allclose(out, ref, atol=1e-5, rtol=1e-5), "mismatch vs reference (default tile)"

    # 2) Small-tile path: multi-step parallel grid (cdiv(2400,512)=5 steps)
    #    with a ragged final block (352 columns) -> verifies OOB masking.
    x = src.reshape(S, B * N).astype(jnp.float32)
    w1t, b1, w2t, b2 = params
    out_small = ffn_pallas(x, w1t, b1, w2t, b2, tn=512)
    out_small = jax.block_until_ready(out_small).reshape(B, N)
    assert jnp.allclose(out_small, ref, atol=1e-5, rtol=1e-5), "mismatch vs reference (tn=512)"

    print("KERNEL_OK")
</pallas_src>

<mosaic_0001>
module attributes {stable_mosaic.version = 11 : i64} {
  func.func @ffn_kernel(%arg0: i32, %arg1: memref<20x2432xf32, #tpu.memory_space<vmem>>, %arg2: memref<16x20xf32, #tpu.memory_space<vmem>>, %arg3: memref<16x1xf32, #tpu.memory_space<vmem>>, %arg4: memref<1x16xf32, #tpu.memory_space<vmem>>, %arg5: memref<1x1xf32, #tpu.memory_space<smem>>, %arg6: memref<1x2432xf32, #tpu.memory_space<vmem>>) attributes {dimension_semantics = [#tpu.dimension_semantics<parallel>], iteration_bounds = array<i64: 1>, scalar_prefetch = 0 : i64, scratch_operands = 0 : i64, tpu.core_type = #tpu.core_type<tc>, window_params = [{transform_indices = @transform_0, window_bounds = array<i64: 20, 2432>}, {pipeline_mode = #tpu.pipeline_mode<synchronous>, transform_indices = @transform_1, window_bounds = array<i64: 16, 20>}, {pipeline_mode = #tpu.pipeline_mode<synchronous>, transform_indices = @transform_2, window_bounds = array<i64: 16, 1>}, {pipeline_mode = #tpu.pipeline_mode<synchronous>, transform_indices = @transform_3, window_bounds = array<i64: 1, 16>}, {transform_indices = @transform_4, window_bounds = array<i64: 1, 1>}, {transform_indices = @transform_5, window_bounds = array<i64: 1, 2432>}]} {
    %c0 = arith.constant 0 : index
    %c0_0 = arith.constant 0 : index
    %0 = vector.load %arg1[%c0, %c0_0] : memref<20x2432xf32, #tpu.memory_space<vmem>>, vector<20x2432xf32>
    %c0_1 = arith.constant 0 : index
    %c0_2 = arith.constant 0 : index
    %1 = vector.load %arg2[%c0_1, %c0_2] : memref<16x20xf32, #tpu.memory_space<vmem>>, vector<16x20xf32>
    %cst = arith.constant dense<0.000000e+00> : vector<16x2432xf32>
    %2 = tpu.matmul %1, %0, %cst {dimension_numbers = #tpu.dot_dimension_numbers<[1], [0], [0], [1], [0, 0, 1, 1], [], []>} : vector<16x20xf32>, vector<20x2432xf32>, vector<16x2432xf32> -> vector<16x2432xf32>
    %c0_3 = arith.constant 0 : index
    %c0_4 = arith.constant 0 : index
    %3 = vector.load %arg3[%c0_3, %c0_4] : memref<16x1xf32, #tpu.memory_space<vmem>>, vector<16x1xf32>
    %4 = vector.broadcast %3 : vector<16x1xf32> to vector<16x2432xf32>
    %5 = arith.addf %2, %4 : vector<16x2432xf32>
    %cst_5 = arith.constant 0.000000e+00 : f32
    %6 = vector.broadcast %cst_5 : f32 to vector<16x2432xf32>
    %7 = arith.maximumf %5, %6 : vector<16x2432xf32>
    %c0_6 = arith.constant 0 : index
    %c0_7 = arith.constant 0 : index
    %8 = vector.load %arg4[%c0_6, %c0_7] : memref<1x16xf32, #tpu.memory_space<vmem>>, vector<1x16xf32>
    %cst_8 = arith.constant dense<0.000000e+00> : vector<1x2432xf32>
    %9 = tpu.matmul %8, %7, %cst_8 {dimension_numbers = #tpu.dot_dimension_numbers<[1], [0], [0], [1], [0, 0, 1, 1], [], []>} : vector<1x16xf32>, vector<16x2432xf32>, vector<1x2432xf32> -> vector<1x2432xf32>
    %c0_9 = arith.constant 0 : index
    %c0_10 = arith.constant 0 : index
    %10 = memref.load %arg5[%c0_9, %c0_10] : memref<1x1xf32, #tpu.memory_space<smem>>
    %11 = vector.broadcast %10 : f32 to vector<1x2432xf32>
    %12 = arith.addf %9, %11 : vector<1x2432xf32>
    %c0_11 = arith.constant 0 : index
    %c0_12 = arith.constant 0 : index
    %13 = vector.load %arg6[%c0_11, %c0_12] : memref<1x2432xf32, #tpu.memory_space<vmem>>, vector<1x2432xf32>
    tpu.vector_store %arg6[%c0_11, %c0_12], %12 {strides = array<i32>} : memref<1x2432xf32, #tpu.memory_space<vmem>>, vector<1x2432xf32>,
    return
  }
  func.func @transform_0(%arg0: i32) -> (i32, i32) {
    %c0_i32 = arith.constant 0 : i32
    %c0_i32_0 = arith.constant 0 : i32
    return %c0_i32, %arg0 : i32, i32
  }
  func.func @transform_1(%arg0: i32) -> (i32, i32) {
    %c0_i32 = arith.constant 0 : i32
    %c0_i32_0 = arith.constant 0 : i32
    %c0_i32_1 = arith.constant 0 : i32
    return %c0_i32, %c0_i32_0 : i32, i32
  }
  func.func @transform_2(%arg0: i32) -> (i32, i32) {
    %c0_i32 = arith.constant 0 : i32
    %c0_i32_0 = arith.constant 0 : i32
    %c0_i32_1 = arith.constant 0 : i32
    return %c0_i32, %c0_i32_0 : i32, i32
  }
  func.func @transform_3(%arg0: i32) -> (i32, i32) {
    %c0_i32 = arith.constant 0 : i32
    %c0_i32_0 = arith.constant 0 : i32
    %c0_i32_1 = arith.constant 0 : i32
    return %c0_i32, %c0_i32_0 : i32, i32
  }
  func.func @transform_4(%arg0: i32) -> (i32, i32) {
    %c0_i32 = arith.constant 0 : i32
    %c0_i32_0 = arith.constant 0 : i32
    %c0_i32_1 = arith.constant 0 : i32
    return %c0_i32, %c0_i32_0 : i32, i32
  }
  func.func @transform_5(%arg0: i32) -> (i32, i32) {
    %c0_i32 = arith.constant 0 : i32
    %c0_i32_0 = arith.constant 0 : i32
    return %c0_i32, %arg0 : i32, i32
  }
}

</mosaic_0001>

<bundles_post_ra>
// kernel: tpu_custom_call.1
= control target key start
LH: loop header
LB: loop body
LE: loop exit
PB: predicated region body
PF: predicated region fallthrough
CT: control target
= control target key end

     0   :  { %11 = vsyncpa [#allocation4], 0  ;;  %s2346_s0 = inlined_call_operand.hbm [shape: f32[20,2400], index: 0, kind: input, shape index: {}]   ;;  %s2347_s1 = inlined_call_operand.vmem [shape: f32[16,20], index: 1, kind: input, shape index: {}]   ;;  %s2348_s2 = inlined_call_operand.vmem [shape: f32[16,1], index: 2, kind: input, shape index: {}]   ;;  %s2349_s3 = inlined_call_operand.vmem [shape: f32[1,16], index: 3, kind: input, shape index: {}]   ;;  %s2350_s4 = inlined_call_operand.<no memory space> [shape: f32[1,1], index: 4, kind: input, shape index: {}]   ;;  %s2351_s5 = inlined_call_operand.hbm [shape: f32[1,2400], index: 5, kind: output, shape index: {}]  }
   0x1   :  { %12 = vsyncpa [#allocation5], 0  ;;  %s2069_s18 = smov [#allocation3]   ;;  %s2021_s22 = scalar_lea.hbm %s2346_s0, 7296 }
   0x2   :  { %s18_s19 = sshll.u32 %s2069_s18, 4  ;;  %p2022_p0 = scmp.ne.s32.totalorder %s2346_s0, %s2021_s22  ;;  %s19_s19 = int_to_ptr.vmem [resolvable:$true] %s18_s19 }
   0x3   :  { %p2025_p1 = scmp.lt.u32.totalorder %s2021_s22, %s2346_s0 }
   0x5   :  { %p2027_p2 = pnand %p2025_p1, %p2022_p0 }
   0x7   :  { %2030 = shalt.err (!%p2027_p2)
}
   0x8   :  { %s2031_s27 = scalar_lea.vmem %s19_s19, 7296  ;;  %p2036_p4 = scmp.lt.s32.totalorder %s19_s19, %s19_s19 }
   0x9   :  { %p2032_p3 = scmp.ne.s32.totalorder %s19_s19, %s2031_s27  ;;  %p2037_p5 = scmp.lt.s32.totalorder %s2031_s27, %s2031_s27 }
   0xb   :  { %p2038_p6 = por %p2037_p5, %p2036_p4 }
   0xd   :  { %p2039_p7 = pnand %p2038_p6, %p2032_p3 }
   0xf   :  { %2042 = shalt.err (!%p2039_p7)
}
  0x10   :  { %s2070_s28 = smov 2432   ;;  %s2071_s29 = smov 152  }
  0x11   :  { %24 = dma.hbm_to_vmem [thread:$0]  %s2346_s0, 7296, %s19_s19, [#allocation4], %s2070_s28, %s2070_s28, %s2071_s29  }
  0x12   :  { %2065 = dma.done.wait [#allocation4], 7296  }
  0x13   :  { %2066 = vsyncadd [#allocation4], 4294960000  ;;  %v2072_v0 = vmov 0.0   ;;  %v2073_v1 = vmov 0   ;;  %v37_v2 = vld [vmem:[#allocation3 + $0x8] sm:$0xff]  ;;  %v56_v3 = vld [vmem:[#allocation3 + $0xa0] sm:$0xff] }
  0x14   :  { %236 = vmatprep.mubr.f32.mxu0 %v2072_v0  ;;  %313 = vmatprep.mubr.f32.mxu1 %v2072_v0  ;;  %v39_v4 = vld [vmem:[#allocation3 + $0x18] sm:$0xff]  ;;  %v1932_v5 = vpack.c.bf16 %v56_v3, %v37_v2  ;;  %v58_v6 = vld [vmem:[#allocation3 + $0xb0] sm:$0xff]  ;;  %v36_v7 = vld [vmem:[#allocation3] sm:$0xff]  ;;  %vm114_vm0 = vcmask 1043456   ;;  %vm107_vm1 = vcmask 162816   ;;  %vm981_vm2 = vcmask 130048  }
  0x15   :  { %2020 = vset.pattern.permute.xlu0 %v2073_v1  ;;  %v55_v8 = vld [vmem:[#allocation3 + $0x98] sm:$0xff]  ;;  %v1936_v9 = vpack.c.bf16 %v58_v6, %v39_v4  ;;  %v38_v11 = vld [vmem:[#allocation3 + $0x10] sm:$0xff]  ;;  %v57_v12 = vld [vmem:[#allocation3 + $0xa8] sm:$0xff]  ;;  %vm2075_vm3 = vmmov 0  }
  0x16   :  { %v1934_v10 = vpack.c.bf16 %v55_v8, %v36_v7  ;;  %v75_v13 = vld [vmem:[#allocation3 + $0x138] sm:$0xf]  ;;  %1933 = vmatprep.subr.bf16.mxu0 %v1932_v5  ;;  %v1938_v14 = vpack.c.bf16 %v57_v12, %v38_v11  ;;  %v77_v15 = vld [vmem:[#allocation3 + $0x148] sm:$0xf]  ;;  %v74_v16 = vld [vmem:[#allocation3 + $0x130] sm:$0xf] }
  0x17   :  { %1937 = vmatprep.subr.bf16.mxu1 %v1936_v9  ;;  %v76_v17 = vld [vmem:[#allocation3 + $0x140] sm:$0xf]  ;;  %v41_v19 = vld [vmem:[#allocation3 + $0x28] sm:$0xff]  ;;  %v59_v22 = vld [vmem:[#allocation3 + $0xb8] sm:$0xff] }
  0x18   :  { %1935 = vmatpush1.bf16.msra.mxu0 %v1934_v10  ;;  %v2125_v18 = vld [vmem:[%s2347_s1] sm:$0xff]  ;;  %1939 = vmatpush1.bf16.msra.mxu1 %v1938_v14  ;;  %v43_v23 = vld [vmem:[#allocation3 + $0x38] sm:$0xff]  ;;  %v62_v25 = vld [vmem:[#allocation3 + $0xd0] sm:$0xff] }
  0x19   :  { %v60_v20 = vld [vmem:[#allocation3 + $0xc0] sm:$0xff]  ;;  %1859 = vmatprep.subr.msk.mxu0 %vm114_vm0, %v75_v13  ;;  %1863 = vmatprep.subr.msk.mxu1 %vm114_vm0, %v77_v15  ;;  %v42_v26 = vld [vmem:[#allocation3 + $0x30] sm:$0xff]  ;;  %v61_v27 = vld [vmem:[#allocation3 + $0xc8] sm:$0xff]  ;;  %v1944_v29 = vpack.c.bf16 %v62_v25, %v43_v23 }
  0x1a   :  { %v40_v21 = vld [vmem:[#allocation3 + $0x20] sm:$0xff]  ;;  %v1940_v24 = vpack.c.bf16 %v60_v20, %v41_v19  ;;  %v1946_v30 = vpack.c.bf16 %v61_v27, %v42_v26  ;;  %v2136_v31 = vld [vmem:[%s2347_s1 + $0x8] sm:$0xff]  ;;  %v79_v32 = vld [vmem:[#allocation3 + $0x158] sm:$0xf] }
  0x1b   :  { %v1942_v28 = vpack.c.bf16 %v59_v22, %v40_v21  ;;  %v78_v33 = vld [vmem:[#allocation3 + $0x150] sm:$0xf]  ;;  %v81_v34 = vld [vmem:[#allocation3 + $0x168] sm:$0xf]  ;;  %v64_v36 = vld [vmem:[#allocation3 + $0xe0] sm:$0xff] }
  0x1c   :  { %1860 = vmatpush1.msk.msra.mxu0 %vm114_vm0, %v74_v16  ;;  %1864 = vmatpush1.msk.msra.mxu1 %vm114_vm0, %v76_v17  ;;  %v45_v35 = vld [vmem:[#allocation3 + $0x48] sm:$0xff]  ;;  %v44_v37 = vld [vmem:[#allocation3 + $0x40] sm:$0xff]  ;;  %v63_v38 = vld [vmem:[#allocation3 + $0xd8] sm:$0xff] }
  0x1d   :  { %1861 = vmatmul.mubr.msk.f32.vlgmr.msra.gmra.mrb[0].mxu0 %vm107_vm1, %v2125_v18  ;;  %1865 = vmatmul.mubr.msk.f32.vlgmr.msra.gmra.mrb[0].mxu1 %vm107_vm1, %v2125_v18  ;;  %v47_v39 = vld [vmem:[#allocation3 + $0x58] sm:$0xff]  ;;  %v66_v40 = vld [vmem:[#allocation3 + $0xf0] sm:$0xff]  ;;  %v80_v41 = vld [vmem:[#allocation3 + $0x160] sm:$0xf]  ;;  %v1948_v42 = vpack.c.bf16 %v64_v36, %v45_v35  ;;  %v1950_v45 = vpack.c.bf16 %v63_v38, %v44_v37 }
  0x1e   :  { %1941 = vmatprep.subr.bf16.mxu0 %v1940_v24  ;;  %1945 = vmatprep.subr.bf16.mxu1 %v1944_v29  ;;  %v46_v43 = vld [vmem:[#allocation3 + $0x50] sm:$0xff]  ;;  %v65_v44 = vld [vmem:[#allocation3 + $0xe8] sm:$0xff]  ;;  %v1952_v46 = vpack.c.bf16 %v66_v40, %v47_v39  ;;  %v83_v48 = vld [vmem:[#allocation3 + $0x178] sm:$0xf] }
  0x1f   :  { %1943 = vmatpush1.bf16.msra.mxu0 %v1942_v28  ;;  %242 = vmatprep.mubr.f32.mxu0 %v2072_v0  ;;  %v1954_v47 = vpack.c.bf16 %v65_v44, %v46_v43  ;;  %v82_v49 = vld [vmem:[#allocation3 + $0x170] sm:$0xf]  ;;  %v85_v50 = vld [vmem:[#allocation3 + $0x188] sm:$0xf]  ;;  %v68_v52 = vld [vmem:[#allocation3 + $0x100] sm:$0xff] }
  0x20   :  { %319 = vmatprep.mubr.f32.mxu1 %v2072_v0  ;;  %1947 = vmatpush1.bf16.msra.mxu1 %v1946_v30  ;;  %v49_v51 = vld [vmem:[#allocation3 + $0x68] sm:$0xff]  ;;  %v48_v53 = vld [vmem:[#allocation3 + $0x60] sm:$0xff]  ;;  %v67_v54 = vld [vmem:[#allocation3 + $0xf8] sm:$0xff] }
  0x21   :  { %1862 = vmatmul.mubr.msk.f32.gmra.mrb[2].mxu0 %vm107_vm1, %v2136_v31  ;;  %1866 = vmatmul.mubr.msk.f32.gmra.mrb[2].mxu1 %vm107_vm1, %v2136_v31  ;;  %v51_v55 = vld [vmem:[#allocation3 + $0x78] sm:$0xff]  ;;  %v70_v56 = vld [vmem:[#allocation3 + $0x110] sm:$0xff]  ;;  %v84_v57 = vld [vmem:[#allocation3 + $0x180] sm:$0xf]  ;;  %v1956_v58 = vpack.c.bf16 %v68_v52, %v49_v51  ;;  %v1958_v61 = vpack.c.bf16 %v67_v54, %v48_v53 }
  0x22   :  { %1867 = vmatprep.subr.msk.mxu0 %vm114_vm0, %v79_v32  ;;  %1871 = vmatprep.subr.msk.mxu1 %vm114_vm0, %v81_v34  ;;  %v50_v59 = vld [vmem:[#allocation3 + $0x70] sm:$0xff]  ;;  %v69_v60 = vld [vmem:[#allocation3 + $0x108] sm:$0xff]  ;;  %v1960_v62 = vpack.c.bf16 %v70_v56, %v51_v55  ;;  %v87_v1 = vld [vmem:[#allocation3 + $0x198] sm:$0xf] }
  0x23   :  { %1868 = vmatpush1.msk.msra.mxu0 %vm114_vm0, %v78_v33  ;;  %390 = vmatprep.mubr.f32.mxu0 %v2072_v0  ;;  %v1962_v63 = vpack.c.bf16 %v69_v60, %v50_v59  ;;  %v86_v2 = vld [vmem:[#allocation3 + $0x190] sm:$0xf]  ;;  %v89_v3 = vld [vmem:[#allocation3 + $0x1a8] sm:$0xf]  ;;  %v72_v5 = vld [vmem:[#allocation3 + $0x120] sm:$0xff] }
  0x24   :  { %467 = vmatprep.mubr.f32.mxu1 %v2072_v0  ;;  %1872 = vmatpush1.msk.msra.mxu1 %vm114_vm0, %v80_v41  ;;  %v53_v4 = vld [vmem:[#allocation3 + $0x88] sm:$0xff]  ;;  %v52_v6 = vld [vmem:[#allocation3 + $0x80] sm:$0xff]  ;;  %v71_v7 = vld [vmem:[#allocation3 + $0x118] sm:$0xff] }
  0x25   :  { %1869 = vmatmul.mubr.msk.f32.vlgmr.msra.gmra.mrb[4].mxu0 %vm107_vm1, %v2125_v18  ;;  %1873 = vmatmul.mubr.msk.f32.vlgmr.msra.gmra.mrb[4].mxu1 %vm107_vm1, %v2125_v18  ;;  %v54_v8 = vld [vmem:[#allocation3 + $0x90] sm:$0xff]  ;;  %v73_v9 = vld [vmem:[#allocation3 + $0x128] sm:$0xff]  ;;  %v88_v10 = vld [vmem:[#allocation3 + $0x1a0] sm:$0xf]  ;;  %v1964_v11 = vpack.c.bf16 %v72_v5, %v53_v4  ;;  %v1966_v12 = vpack.c.bf16 %v71_v7, %v52_v6 }
  0x26   :  { %1949 = vmatprep.subr.bf16.mxu0 %v1948_v42  ;;  %1953 = vmatprep.subr.bf16.mxu1 %v1952_v46  ;;  %v1968_v13 = vpack.c.bf16 %v73_v9, %v54_v8  ;;  %v91_v14 = vld [vmem:[#allocation3 + $0x1b8] sm:$0xf]  ;;  %v90_v15 = vld [vmem:[#allocation3 + $0x1b0] sm:$0xf]  ;;  %v92_v16 = vld [vmem:[#allocation3 + $0x1c0] sm:$0xf] }
  0x27   :  { %1951 = vmatpush1.bf16.msra.mxu0 %v1950_v45  ;;  %396 = vmatprep.mubr.f32.mxu0 %v2072_v0  ;;  %v95_v17 = vld [vmem:[%s2348_s2] sm:$0xff]  ;;  %v96_v19 = vld [vmem:[%s2348_s2 + $0x8] sm:$0xff] }
  0x28   :  { %473 = vmatprep.mubr.f32.mxu1 %v2072_v0  ;;  %1955 = vmatpush1.bf16.msra.mxu1 %v1954_v47 }
  0x29   :  { %1870 = vmatmul.mubr.msk.f32.gmra.mrb[6].mxu0 %vm107_vm1, %v2136_v31  ;;  %1874 = vmatmul.mubr.msk.f32.gmra.mrb[6].mxu1 %vm107_vm1, %v2136_v31 }
  0x2a   :  { %1875 = vmatprep.subr.msk.mxu0 %vm114_vm0, %v83_v48  ;;  %1879 = vmatprep.subr.msk.mxu1 %vm114_vm0, %v85_v50 }
  0x2b   :  { %1876 = vmatpush1.msk.msra.mxu0 %vm114_vm0, %v82_v49  ;;  %544 = vmatprep.mubr.f32.mxu0 %v2072_v0 }
  0x2c   :  { %621 = vmatprep.mubr.f32.mxu1 %v2072_v0  ;;  %1880 = vmatpush1.msk.msra.mxu1 %vm114_vm0, %v84_v57 }
  0x2d   :  { %1877 = vmatmul.mubr.msk.f32.vlgmr.msra.gmra.mrb[8].mxu0 %vm107_vm1, %v2125_v18  ;;  %1881 = vmatmul.mubr.msk.f32.vlgmr.msra.gmra.mrb[8].mxu1 %vm107_vm1, %v2125_v18 }
  0x2e   :  { %1957 = vmatprep.subr.bf16.mxu0 %v1956_v58  ;;  %1961 = vmatprep.subr.bf16.mxu1 %v1960_v62 }
  0x2f   :  { %1959 = vmatpush1.bf16.msra.mxu0 %v1958_v61  ;;  %550 = vmatprep.mubr.f32.mxu0 %v2072_v0  ;;  %v2236_v61 = vld [vmem:[%s2349_s3] sm:$0x1] }
  0x30   :  { %627 = vmatprep.mubr.f32.mxu1 %v2072_v0  ;;  %1963 = vmatpush1.bf16.msra.mxu1 %v1962_v63 }
  0x31   :  { %1878 = vmatmul.mubr.msk.f32.gmra.mrb[10].mxu0 %vm107_vm1, %v2136_v31  ;;  %1882 = vmatmul.mubr.msk.f32.gmra.mrb[10].mxu1 %vm107_vm1, %v2136_v31 }
  0x32   :  { %1883 = vmatprep.subr.msk.mxu0 %vm114_vm0, %v87_v1  ;;  %1887 = vmatprep.subr.msk.mxu1 %vm114_vm0, %v89_v3 }
  0x33   :  { %1884 = vmatpush1.msk.msra.mxu0 %vm114_vm0, %v86_v2  ;;  %698 = vmatprep.mubr.f32.mxu0 %v2072_v0 }
  0x34   :  { %775 = vmatprep.mubr.f32.mxu1 %v2072_v0  ;;  %1888 = vmatpush1.msk.msra.mxu1 %vm114_vm0, %v88_v10 }
  0x35   :  { %1885 = vmatmul.mubr.msk.f32.vlgmr.msra.gmra.mrb[12].mxu0 %vm107_vm1, %v2125_v18  ;;  %1889 = vmatmul.mubr.msk.f32.vlgmr.msra.gmra.mrb[12].mxu1 %vm107_vm1, %v2125_v18 }
  0x36   :  { %1965 = vmatprep.subr.bf16.mxu0 %v1964_v11  ;;  %1969 = vmatprep.subr.bf16.mxu1 %v1968_v13 }
  0x37   :  { %1967 = vmatpush1.bf16.msra.mxu0 %v1966_v12  ;;  %704 = vmatprep.mubr.f32.mxu0 %v2072_v0 }
  0x38   :  { %781 = vmatprep.mubr.f32.mxu1 %v2072_v0  ;;  %1971 = vmatpush3.bf16.msra.mxu1 %v1968_v13 }
  0x39   :  { %1886 = vmatmul.mubr.msk.f32.gmra.mrb[14].mxu0 %vm107_vm1, %v2136_v31  ;;  %1890 = vmatmul.mubr.msk.f32.gmra.mrb[14].mxu1 %vm107_vm1, %v2136_v31 }
  0x3a   :  { %1891 = vmatprep.subr.msk.mxu0 %vm114_vm0, %v91_v14  ;;  %1920 = vmatprep.subr.msk.mxu1 %vm114_vm0, %v92_v16 }
  0x3b   :  { %1892 = vmatpush1.msk.msra.mxu0 %vm114_vm0, %v90_v15  ;;  %852 = vmatprep.mubr.f32.mxu0 %v2072_v0 }
  0x3c   :  { %1922 = vmatprep.mubr.msk.f32.mxu1 %vm107_vm1, %v2125_v18  ;;  %1921 = vmatpush3.msk.msra.mxu1 %vm114_vm0, %v92_v16 }
  0x3d   :  { %1893 = vmatmul.mubr.msk.f32.vlgmr.msra.gmra.mrb[16].mxu0 %vm107_vm1, %v2125_v18  ;;  %1923 = vmatmul.mubr.msk.f32.vlgmr.msra.gmra.mrb[16].mxu1 %vm107_vm1, %v2136_v31 }
  0x3e   :  { %858 = vmatprep.mubr.f32.mxu0 %v2072_v0  ;;  %99 = vperm.xlu0 %2020, %v95_v17  }
  0x3f   :  { %1049 = vmatprep.mubr.f32.mxu1 %v2072_v0 }
  0x41   :  { %1894 = vmatmul.mubr.msk.f32.gmra.mrb[18].mxu0 %vm107_vm1, %v2136_v31 }
  0x42   :  { %1120 = vmatprep.mubr.f32.mxu0 %v2072_v0  ;;  %104 = vperm.xlu0 %2020, %v96_v19  }
  0xbd   :  { %v2216_v20 = vpop.permute.xlu0 %99 }
  0xc1   :  { %v2219_v25 = vpop.permute.xlu0 %104 }
  0xf0   :  { %v238_v18 = vpop.f32.mrb[0].mxu0  ;;  %v315_v22 = vpop.f32.mrb[0].mxu1 }
  0xf1   :  { %v240_v21 = vpop.f32.mrb[1].mxu0  ;;  %v316_v23 = vadd.f32 %v315_v22, %v2216_v20  ;;  %v317_v24 = vpop.f32.mrb[1].mxu1  ;;  %v239_v26 = vadd.f32 %v238_v18, %v2216_v20 }
  0xf2   :  { %v318_v27 = vadd.f32 %v317_v24, %v2216_v20  ;;  %v241_v28 = vadd.f32 %v240_v21, %v2216_v20 }
  0xf3   :  { %v942_v33 = vmax.f32 %v316_v23, 0.0  ;;  %v940_v37 = vmax.f32 %v239_v26, 0.0 }
  0xf4   :  { %v244_v29 = vpop.f32.mrb[2].mxu0  ;;  %v321_v31 = vpop.f32.mrb[2].mxu1  ;;  %v943_v38 = vmax.f32 %v318_v27, 0.0  ;;  %v941_v41 = vmax.f32 %v241_v28, 0.0 }
  0xf5   :  { %v245_v30 = vadd.f32 %v244_v29, %v2219_v25  ;;  %v246_v32 = vpop.f32.mrb[3].mxu0  ;;  %v322_v34 = vadd.f32 %v321_v31, %v2219_v25  ;;  %v323_v36 = vpop.f32.mrb[3].mxu1 }
  0xf6   :  { %v247_v35 = vadd.f32 %v246_v32, %v2219_v25  ;;  %v324_v40 = vadd.f32 %v323_v36, %v2219_v25 }
  0xf7   :  { %v959_v39 = vmax.f32 %v245_v30, 0.0  ;;  %v961_v42 = vmax.f32 %v322_v34, 0.0 }
  0xf8   :  { %v960_v43 = vmax.f32 %v247_v35, 0.0  ;;  %v392_v44 = vpop.f32.mrb[4].mxu0  ;;  %v962_v46 = vmax.f32 %v324_v40, 0.0  ;;  %v469_v48 = vpop.f32.mrb[4].mxu1 }
  0xf9   :  { %v1974_v45 = vpack.c.bf16 %v959_v39, %v940_v37  ;;  %v394_v47 = vpop.f32.mrb[5].mxu0  ;;  %v1978_v49 = vpack.c.bf16 %v961_v42, %v942_v33  ;;  %v470_v51 = vadd.f32 %v469_v48, %v2216_v20  ;;  %v471_v52 = vpop.f32.mrb[5].mxu1  ;;  %v393_v54 = vadd.f32 %v392_v44, %v2216_v20 }
  0xfa   :  { %v1972_v50 = vpack.c.bf16 %v960_v43, %v941_v41  ;;  %v1976_v53 = vpack.c.bf16 %v962_v46, %v943_v38  ;;  %v472_v55 = vadd.f32 %v471_v52, %v2216_v20  ;;  %v395_v56 = vadd.f32 %v394_v47, %v2216_v20 }
  0xfb   :  { %v946_v62 = vmax.f32 %v470_v51, 0.0  ;;  %v944_v3 = vmax.f32 %v393_v54, 0.0 }
  0xfc   :  { %v398_v57 = vpop.f32.mrb[6].mxu0  ;;  %1973 = vmatprep.subr.bf16.mxu1 %v1972_v50  ;;  %v475_v59 = vpop.f32.mrb[6].mxu1  ;;  %1977 = vmatprep.subr.bf16.mxu0 %v1976_v53  ;;  %v947_v4 = vmax.f32 %v472_v55, 0.0  ;;  %v945_v7 = vmax.f32 %v395_v56, 0.0 }
  0xfd   :  { %v399_v58 = vadd.f32 %v398_v57, %v2219_v25  ;;  %v400_v60 = vpop.f32.mrb[7].mxu0  ;;  %1975 = vmatpush1.bf16.msra.mxu1 %v1974_v45  ;;  %v476_v63 = vadd.f32 %v475_v59, %v2219_v25  ;;  %v477_v2 = vpop.f32.mrb[7].mxu1  ;;  %1979 = vmatpush1.bf16.msra.mxu0 %v1978_v49 }
  0xfe   :  { %v401_v1 = vadd.f32 %v400_v60, %v2219_v25  ;;  %v478_v6 = vadd.f32 %v477_v2, %v2219_v25 }
  0xff   :  { %v963_v5 = vmax.f32 %v399_v58, 0.0  ;;  %v965_v8 = vmax.f32 %v476_v63, 0.0 }
 0x100   :  { %v964_v9 = vmax.f32 %v401_v1, 0.0  ;;  %v546_v10 = vpop.f32.mrb[8].mxu0  ;;  %1898 = vmatmul.mubr.msk.f32.vlgmr.msra.gmra.mrb[18].mxu1 %vm981_vm2, %v2236_v61  ;;  %v966_v12 = vmax.f32 %v478_v6, 0.0  ;;  %v623_v13 = vpop.f32.mrb[8].mxu1  ;;  %1899 = vmatmul.mubr.msk.f32.vlgmr.msra.gmra.mrb[20].mxu0 %vm981_vm2, %v2236_v61 }
 0x101   :  { %v1982_v11 = vpack.c.bf16 %v963_v5, %v944_v3  ;;  %v548_v14 = vpop.f32.mrb[9].mxu0  ;;  %1191 = vmatprep.mubr.f32.mxu1 %v2072_v0  ;;  %v1986_v15 = vpack.c.bf16 %v965_v8, %v946_v62  ;;  %v625_v17 = vpop.f32.mrb[9].mxu1  ;;  %1262 = vmatprep.mubr.f32.mxu0 %v2072_v0  ;;  %v547_v18 = vadd.f32 %v546_v10, %v2216_v20 }
 0x102   :  { %v1980_v16 = vpack.c.bf16 %v964_v9, %v945_v7  ;;  %v1984_v19 = vpack.c.bf16 %v966_v12, %v947_v4  ;;  %v624_v21 = vadd.f32 %v623_v13, %v2216_v20  ;;  %v549_v22 = vadd.f32 %v548_v14, %v2216_v20 }
 0x103   :  { %v626_v24 = vadd.f32 %v625_v17, %v2216_v20  ;;  %v948_v32 = vmax.f32 %v547_v18, 0.0 }
 0x104   :  { %v552_v23 = vpop.f32.mrb[10].mxu0  ;;  %1981 = vmatprep.subr.bf16.mxu1 %v1980_v16  ;;  %v629_v27 = vpop.f32.mrb[10].mxu1  ;;  %1985 = vmatprep.subr.bf16.mxu0 %v1984_v19  ;;  %v950_v35 = vmax.f32 %v624_v21, 0.0  ;;  %v949_v36 = vmax.f32 %v549_v22, 0.0 }
 0x105   :  { %v553_v26 = vadd.f32 %v552_v23, %v2219_v25  ;;  %v554_v28 = vpop.f32.mrb[11].mxu0  ;;  %1983 = vmatpush1.bf16.msra.mxu1 %v1982_v11  ;;  %v630_v29 = vadd.f32 %v629_v27, %v2219_v25  ;;  %v631_v31 = vpop.f32.mrb[11].mxu1  ;;  %1987 = vmatpush1.bf16.msra.mxu0 %v1986_v15  ;;  %v951_v40 = vmax.f32 %v626_v24, 0.0 }
 0x106   :  { %v555_v30 = vadd.f32 %v554_v28, %v2219_v25  ;;  %v632_v34 = vadd.f32 %v631_v31, %v2219_v25 }
 0x107   :  { %v967_v33 = vmax.f32 %v553_v26, 0.0  ;;  %v969_v37 = vmax.f32 %v630_v29, 0.0 }
 0x108   :  { %v968_v38 = vmax.f32 %v555_v30, 0.0  ;;  %v700_v39 = vpop.f32.mrb[12].mxu0  ;;  %1900 = vmatmul.mubr.msk.f32.vlgmr.msra.gmra.mrb[20].mxu1 %vm981_vm2, %v2236_v61  ;;  %v970_v42 = vmax.f32 %v632_v34, 0.0  ;;  %v777_v43 = vpop.f32.mrb[12].mxu1  ;;  %1901 = vmatmul.mubr.msk.f32.vlgmr.msra.gmra.mrb[22].mxu0 %vm981_vm2, %v2236_v61  ;;  %v2074_v30 = vmov 0.0|0.0  }
 0x109   :  { %v1990_v41 = vpack.c.bf16 %v967_v33, %v948_v32  ;;  %v702_v44 = vpop.f32.mrb[13].mxu0  ;;  %1333 = vmatprep.mubr.f32.mxu1 %v2072_v0  ;;  %v1994_v45 = vpack.c.bf16 %v969_v37, %v950_v35  ;;  %v779_v47 = vpop.f32.mrb[13].mxu1  ;;  %1404 = vmatprep.mubr.f32.mxu0 %v2072_v0  ;;  %v701_v49 = vadd.f32 %v700_v39, %v2216_v20  ;;  %v1720_v35 = vlaneseq }
 0x10a   :  { %v1988_v46 = vpack.c.bf16 %v968_v38, %v949_v36  ;;  %v1992_v48 = vpack.c.bf16 %v970_v42, %v951_v40  ;;  %v778_v50 = vadd.f32 %v777_v43, %v2216_v20  ;;  %v703_v51 = vadd.f32 %v702_v44, %v2216_v20 }
 0x10b   :  { %v780_v53 = vadd.f32 %v779_v47, %v2216_v20  ;;  %v952_v60 = vmax.f32 %v701_v49, 0.0  ;;  %v2294_v36 = vstv %s2350_s4  ;;  %v1721_v38 = vshrl.u32 %v1720_v35, 7  ;;  %s2077_s4 = smov [#allocation6]  }
 0x10c   :  { %v706_v52 = vpop.f32.mrb[14].mxu0  ;;  %1989 = vmatprep.subr.bf16.mxu1 %v1988_v46  ;;  %v783_v55 = vpop.f32.mrb[14].mxu1  ;;  %1993 = vmatprep.subr.bf16.mxu0 %v1992_v48  ;;  %v954_v1 = vmax.f32 %v778_v50, 0.0  ;;  %v953_v2 = vmax.f32 %v703_v51, 0.0  ;;  %s1850_s15 = sshll.u32 %s2077_s4, 4  ;;  %vm1841_vm4 = vcmp.lt.s32.totalorder %v1720_v35, 384  ;;  %s1851_s15 = int_to_ptr.vmem [resolvable:$true] %s1850_s15 }
 0x10d   :  { %v707_v54 = vadd.f32 %v706_v52, %v2219_v25  ;;  %v708_v56 = vpop.f32.mrb[15].mxu0  ;;  %1991 = vmatpush1.bf16.msra.mxu1 %v1990_v41  ;;  %v784_v57 = vadd.f32 %v783_v55, %v2219_v25  ;;  %v785_v59 = vpop.f32.mrb[15].mxu1  ;;  %1995 = vmatpush1.bf16.msra.mxu0 %v1994_v45  ;;  %v955_v6 = vmax.f32 %v780_v53, 0.0  ;;  %s2043_s16 = scalar_lea.vmem %s1851_s15, 304  ;;  %s2047_s17 = scalar_lea.vmem %s1851_s15, 320 }
 0x10e   :  { %v709_v58 = vadd.f32 %v708_v56, %v2219_v25  ;;  %v786_v63 = vadd.f32 %v785_v59, %v2219_v25  ;;  %p2044_p8 = scmp.ne.s32.totalorder %s1851_s15, %s2043_s16  ;;  %p2048_p9 = scmp.lt.s32.totalorder %s1851_s15, %s1851_s15 }
 0x10f   :  { %v971_v62 = vmax.f32 %v707_v54, 0.0  ;;  %v973_v3 = vmax.f32 %v784_v57, 0.0  ;;  %p2049_p10 = scmp.lt.s32.totalorder %s2047_s17, %s2043_s16 }
 0x110   :  { %v972_v4 = vmax.f32 %v709_v58, 0.0  ;;  %v854_v5 = vpop.f32.mrb[16].mxu0  ;;  %1902 = vmatmul.mubr.msk.f32.vlgmr.msra.gmra.mrb[22].mxu1 %vm981_vm2, %v2236_v61  ;;  %v974_v8 = vmax.f32 %v786_v63, 0.0  ;;  %v1924_v9 = vpop.f32.mrb[16].mxu1  ;;  %1903 = vmatmul.mubr.msk.f32.vlgmr.msra.gmra.mrb[24].mxu0 %vm981_vm2, %v2236_v61 }
 0x111   :  { %v1998_v7 = vpack.c.bf16 %v971_v62, %v952_v60  ;;  %v856_v10 = vpop.f32.mrb[17].mxu0  ;;  %1475 = vmatprep.mubr.f32.mxu1 %v2072_v0  ;;  %v2002_v11 = vpack.c.bf16 %v973_v3, %v954_v1  ;;  %v937_v13 = vadd.f32 %v1924_v9, %v2219_v25  ;;  %v931_v14 = vpop.f32.mrb[17].mxu1  ;;  %1546 = vmatprep.mubr.f32.mxu0 %v2072_v0  ;;  %p2050_p11 = por %p2049_p10, %p2048_p9 }
 0x112   :  { %v1996_v12 = vpack.c.bf16 %v972_v4, %v953_v2  ;;  %v2000_v15 = vpack.c.bf16 %v974_v8, %v955_v6  ;;  %v855_v16 = vadd.f32 %v854_v5, %v2216_v20  ;;  %v932_v17 = vadd.f32 %v931_v14, %v2216_v20 }
 0x113   :  { %v977_v19 = vmax.f32 %v937_v13, 0.0  ;;  %v857_v18 = vadd.f32 %v856_v10, %v2216_v20  ;;  %p2051_p12 = pnand %p2050_p11, %p2044_p8 }
 0x114   :  { %v860_v21 = vpop.f32.mrb[18].mxu0  ;;  %1997 = vmatprep.subr.bf16.mxu1 %v1996_v12  ;;  %v958_v22 = vmax.f32 %v932_v17, 0.0  ;;  %2001 = vmatprep.subr.bf16.mxu0 %v2000_v15  ;;  %v956_v27 = vmax.f32 %v855_v16, 0.0 }
 0x115   :  { %v861_v23 = vadd.f32 %v860_v21, %v2219_v25  ;;  %v862_v24 = vpop.f32.mrb[19].mxu0  ;;  %1999 = vmatpush1.bf16.msra.mxu1 %v1998_v7  ;;  %2003 = vmatpush1.bf16.msra.mxu0 %v2002_v11  ;;  %v957_v31 = vmax.f32 %v857_v18, 0.0 }
 0x116   :  { %v863_v26 = vadd.f32 %v862_v24, %v2219_v25  ;;  %v2009_v28 = vpack.c.bf16 %v977_v19, %v958_v22  ;;  %2008 = vmatprep.subr.bf16.mxu0 %v2074_v30  ;;  %v2076_v25 = vmov 1966171168  }
 0x117   :  { %v975_v29 = vmax.f32 %v861_v23, 0.0  ;;  %v1718_v34 = vunpack.c.l.s4 %v2076_v25 }
 0x118   :  { %v976_v32 = vmax.f32 %v863_v26, 0.0  ;;  %1904 = vmatmul.mubr.msk.f32.vlgmr.msra.gmra.mrb[24].mxu1 %vm981_vm2, %v2236_v61  ;;  %1905 = vmatmul.mubr.msk.f32.vlgmr.msra.gmra.mrb[26].mxu0 %vm981_vm2, %v2236_v61 }
 0x119   :  { %v2006_v20 = vpack.c.bf16 %v975_v29, %v956_v27  ;;  %1617 = vmatprep.mubr.f32.mxu1 %v2072_v0  ;;  %2010 = vmatpush3.bf16.msra.mxu0 %v2009_v28  ;;  %v1719_v37 = vunpack.c.0.s8 %v1718_v34 }
 0x11a   :  { %v2004_v33 = vpack.c.bf16 %v976_v32, %v957_v31  ;;  %1929 = vmatprep.mubr.msk.f32.mxu0 %vm2075_vm3, %v2072_v0 }
 0x11b   :  { %v2300_v43 = vsub.s32 %v1719_v37, %v1721_v38 }
 0x11c   :  { %2005 = vmatprep.subr.bf16.mxu1 %v2004_v33  ;;  %1930 = vmatmul.mubr.msk.f32.vlgmr.msra.gmra.mrb[28].mxu0 %vm981_vm2, %v2236_v61 }
 0x11d   :  { %2007 = vmatpush1.bf16.msra.mxu1 %v2006_v20 }
 0x120   :  { %1906 = vmatmul.mubr.msk.f32.vlgmr.msra.gmra.mrb[26].mxu1 %vm981_vm2, %v2236_v61 }
 0x1d3   :  { %v1051_v0 = vpop.f32.mrb[18].mxu1  ;;  %v1122_v40 = vpop.f32.mrb[20].mxu0 }
 0x1d4   :  { %v1052_v39 = vadd.f32 %v1051_v0, %v2294_v36  ;;  %v1053_v41 = vpop.f32.mrb[19].mxu1  ;;  %v1123_v42 = vadd.f32 %v1122_v40, %v2294_v36  ;;  %v1124_v44 = vpop.f32.mrb[21].mxu0 }
 0x1d5   :  { %v1054_v61 = vadd.f32 %v1053_v41, %v2294_v36  ;;  %v1125_v45 = vadd.f32 %v1124_v44, %v2294_v36 }
 0x1d7   :  { %v1713_v46 = vcombine.low %v1052_v39, %v1054_v61  ;;  %v1714_v47 = vcombine.low %v1123_v42, %v1125_v45 }
 0x1d9   :  { %v1723_v48 = vrot.slane %v1713_v46, %v2300_v43  ;;  %v1730_v49 = vrot.slane %v1714_v47, %v2300_v43 }
 0x1db   :  { %v1193_v50 = vpop.f32.mrb[20].mxu1  ;;  %v1745_v51 = vcombine.low %v1723_v48, %v1730_v49  ;;  %v1264_v53 = vpop.f32.mrb[22].mxu0 }
 0x1dc   :  { %v1194_v52 = vadd.f32 %v1193_v50, %v2294_v36  ;;  %v1195_v54 = vpop.f32.mrb[21].mxu1  ;;  %v1265_v55 = vadd.f32 %v1264_v53, %v2294_v36  ;;  %v1266_v57 = vpop.f32.mrb[23].mxu0 }
 0x1dd   :  { %v1196_v56 = vadd.f32 %v1195_v54, %v2294_v36  ;;  %v1267_v58 = vadd.f32 %v1266_v57, %v2294_v36  ;;  %v1753_v2 = vrot.slane %v1745_v51, %v2300_v43 }
 0x1df   :  { %v1715_v59 = vcombine.low %v1194_v52, %v1196_v56  ;;  %v1716_v60 = vcombine.low %v1265_v55, %v1267_v58 }
 0x1e1   :  { %v1737_v62 = vrot.slane %v1715_v59, %v2300_v43  ;;  %v1744_v63 = vrot.slane %v1716_v60, %v2300_v43 }
 0x1e3   :  { %v1335_v1 = vpop.f32.mrb[22].mxu1  ;;  %v1746_v3 = vcombine.low %v1737_v62, %v1744_v63  ;;  %v1406_v5 = vpop.f32.mrb[24].mxu0 }
 0x1e4   :  { %v1336_v4 = vadd.f32 %v1335_v1, %v2294_v36  ;;  %v1337_v6 = vpop.f32.mrb[23].mxu1  ;;  %v1407_v7 = vadd.f32 %v1406_v5, %v2294_v36  ;;  %v1408_v9 = vpop.f32.mrb[25].mxu0 }
 0x1e5   :  { %v1338_v8 = vadd.f32 %v1337_v6, %v2294_v36  ;;  %v1760_v10 = vrot.slane %v1746_v3, %v2300_v43  ;;  %v1409_v11 = vadd.f32 %v1408_v9, %v2294_v36 }
 0x1e7   :  { %v1762_v12 = vcombine.low %v1336_v4, %v1338_v8  ;;  %v1763_v13 = vcombine.low %v1407_v7, %v1409_v11  ;;  %v1761_v14 = vcombine.low %v1753_v2, %v1760_v10 }
 0x1e9   :  { %v1772_v15 = vrot.slane %v1762_v12, %v2300_v43  ;;  %v1779_v16 = vrot.slane %v1763_v13, %v2300_v43  ;;  %1837 = vst [vmem:[#allocation6] sm:$0xff] %v1761_v14 }
 0x1eb   :  { %v1477_v17 = vpop.f32.mrb[24].mxu1  ;;  %v1794_v19 = vcombine.low %v1772_v15, %v1779_v16  ;;  %v1548_v21 = vpop.f32.mrb[26].mxu0 }
 0x1ec   :  { %v1478_v18 = vadd.f32 %v1477_v17, %v2294_v36  ;;  %v1479_v22 = vpop.f32.mrb[25].mxu1  ;;  %v1549_v23 = vadd.f32 %v1548_v21, %v2294_v36  ;;  %v1550_v26 = vpop.f32.mrb[27].mxu0 }
 0x1ed   :  { %v1480_v24 = vadd.f32 %v1479_v22, %v2294_v36  ;;  %v1551_v27 = vadd.f32 %v1550_v26, %v2294_v36  ;;  %v1802_v34 = vrot.slane %v1794_v19, %v2300_v43 }
 0x1ef   :  { %v1764_v28 = vcombine.low %v1478_v18, %v1480_v24  ;;  %v1765_v29 = vcombine.low %v1549_v23, %v1551_v27  ;;  %v1690_v30 = vpop.f32.mrb[28].mxu0 }
 0x1f0   :  { %v1931_v32 = vpop.f32.mrb[29].mxu0  ;;  %v1691_v25 = vadd.f32 %v1690_v30, %v2294_v36 }
 0x1f1   :  { %v1786_v31 = vrot.slane %v1764_v28, %v2300_v43  ;;  %v1793_v20 = vrot.slane %v1765_v29, %v2300_v43 }
 0x1f2   :  { %v1825_v42 = vrot.slane %v1691_v25, %v2300_v43 }
 0x1f3   :  { %v1619_v33 = vpop.f32.mrb[26].mxu1  ;;  %v1795_v37 = vcombine.low %v1786_v31, %v1793_v20 }
 0x1f4   :  { %v1620_v38 = vadd.f32 %v1619_v33, %v2294_v36  ;;  %v1621_v0 = vpop.f32.mrb[27].mxu1 }
 0x1f5   :  { %v1622_v39 = vadd.f32 %v1621_v0, %v2294_v36  ;;  %v1809_v40 = vrot.slane %v1795_v37, %v2300_v43 }
 0x1f7   :  { %v1811_v41 = vcombine.low %v1620_v38, %v1622_v39  ;;  %v1810_v61 = vcombine.low %v1802_v34, %v1809_v40 }
 0x1f9   :  { %v1818_v44 = vrot.slane %v1811_v41, %v2300_v43  ;;  %1838 = vst [vmem:[#allocation6 + $0x8] sm:$0xff] %v1810_v61 }
 0x1fb   :  { %v1826_v45 = vcombine.low %v1818_v44, %v1825_v42 }
 0x1fd   :  { %v1833_v46 = vrot.slane %v1826_v45, %v2300_v43 }
 0x1ff   :  { %1843 = vst.msk [vmem:[#allocation6 + $0x10] sm:$0x7] %vm1841_vm4, %v1833_v46 }
 0x200   :  { %2054 = shalt.err (!%p2051_p12)
}
 0x201   :  { %s2055_s20 = scalar_lea.hbm %s2351_s5, 304 }
 0x202   :  { %p2056_p13 = scmp.ne.s32.totalorder %s2351_s5, %s2055_s20  ;;  %p2059_p0 = scmp.lt.u32.totalorder %s2055_s20, %s2351_s5 }
 0x204   :  { %p2061_p1 = pnand %p2059_p0, %p2056_p13 }
 0x206   :  { %2064 = shalt.err (!%p2061_p1)
}
 0x207   :  { %1853 = dma.vmem_to_hbm [thread:$0]  %s1851_s15, 304, %s2351_s5, [#allocation5]  }
 0x208   :  { %2067 = dma.done.wait [#allocation5], 304  }
 0x209   :  { %2068 = vsyncadd [#allocation5], 4294966992 }
 0x20a   :  { %1857 = vsyncpa [#allocation4], 1 }
 0x20b   :  { %1858 = vsyncpa [#allocation5], 1 }

</bundles_post_ra>
